<compile_context>
chip_gen: v5e
topology: v5e:2x2
jax: 0.10.0
libtpu: 0.0.40
codegen_flags: <defaults>
</compile_context>

<pallas_src>
import functools

import jax
import jax.numpy as jnp
from jax.experimental import pallas as pl
from jax.experimental.pallas import tpu as pltpu


def _round_up(a: int, b: int) -> int:
    return ((a + b - 1) // b) * b


def _convlayer_kernel(xp_ref, wbig_ref, bbig_ref, seg_ref, o_ref):
    # xp_ref  : (TM, 128)       packed input rows (P original rows per row)
    # wbig_ref: (128, P*Cout)   kron(I_P, W^T), block-diagonal weights
    # bbig_ref: (1, P*Cout)     bias tiled P times
    # seg_ref : (P*Cout, P)     0/1 matrix summing the Cout channels per row
    # o_ref   : (TM, P)         per-original-row sum_c relu(linear(x)[c])
    y = jnp.dot(xp_ref[...], wbig_ref[...], preferred_element_type=jnp.float32)
    y = jnp.maximum(y + bbig_ref[...], 0.0)
    o_ref[...] = jnp.dot(y, seg_ref[...], preferred_element_type=jnp.float32)


@functools.partial(jax.jit, static_argnames=("tile_m",))
def conv_layer_forward(x, weight, bias, *, tile_m: int = 8192):
    """x: (N, C, H, 2*in_ch) f32; weight: (in_ch, 2*in_ch); bias: (in_ch,)."""
    N, C, H, K = x.shape
    Cout, K_w = weight.shape
    assert K_w == K, "weight in_features must match x last dim"
    R = N * C * H

    x_flat = x.reshape(R, K).astype(jnp.float32)
    w = weight.astype(jnp.float32)
    b = bias.astype(jnp.float32)

    # Pack P = 128 // K consecutive rows per 128-lane vector row (lane-dense
    # loads). Pad K with zero features up to a divisor of 128 if needed.
    assert K <= 128, "in_features > 128 needs a K-chunked accumulation variant"
    # TODO(synk): add a K-chunked (grid over K with VMEM accumulator) variant
    # for in_features > 128.
    K_pad = next(d for d in (1, 2, 4, 8, 16, 32, 64, 128) if d >= K)
    if K_pad != K:
        x_flat = jnp.pad(x_flat, ((0, 0), (0, K_pad - K)))
        w = jnp.pad(w, ((0, 0), (0, K_pad - K)))
    P = 128 // K_pad                               # rows packed per vector row

    # Tile the packed-row axis; Pallas double-buffers the tiles (DMA/compute
    # overlap). Pad rows so the grid divides evenly; padded rows are discarded.
    M = pl.cdiv(R, P)
    tm = _round_up(min(tile_m, _round_up(M, 8)), 8)
    M_pad = _round_up(M, tm)
    pad_rows = M_pad * P - R
    if pad_rows:
        x_flat = jnp.pad(x_flat, ((0, pad_rows), (0, 0)))
    x_packed = x_flat.reshape(M_pad, P * K_pad)    # (M_pad, 128), free reshape

    # Small constant operands (stay resident in VMEM across the grid).
    w_big = jnp.kron(jnp.eye(P, dtype=jnp.float32), w.T)        # (128, P*Cout)
    b_big = jnp.tile(b, P).reshape(1, P * Cout)                 # (1, P*Cout)
    seg = jnp.kron(jnp.eye(P, dtype=jnp.float32),
                   jnp.ones((Cout, 1), jnp.float32))            # (P*Cout, P)

    grid = (M_pad // tm,)
    row_sums = pl.pallas_call(
        _convlayer_kernel,
        out_shape=jax.ShapeDtypeStruct((M_pad, P), jnp.float32),
        grid=grid,
        in_specs=[
            pl.BlockSpec((tm, P * K_pad), lambda i: (i, 0)),
            pl.BlockSpec((P * K_pad, P * Cout), lambda i: (0, 0)),
            pl.BlockSpec((1, P * Cout), lambda i: (0, 0)),
            pl.BlockSpec((P * Cout, P), lambda i: (0, 0)),
        ],
        out_specs=pl.BlockSpec((tm, P), lambda i: (i, 0)),
        compiler_params=pltpu.CompilerParams(
            dimension_semantics=("parallel",),
        ),
    )(x_packed, w_big, b_big, seg)

    # Segmented (H, Cout) mean == AdaptiveAvgPool2d((1, 1)).
    row_sums = row_sums.reshape(M_pad * P)[:R]        # per-row sum over Cout
    pooled = row_sums.reshape(N * C, H).sum(axis=1) / (H * Cout)
    return pooled.reshape(N, C, 1, 1)


def init_params(key, in_channels):
    """Deterministic Linear(2*in_ch -> in_ch) params (PyTorch-like uniform init)."""
    k_w, k_b = jax.random.split(key)
    fan_in = in_channels * 2
    bound = 1.0 / jnp.sqrt(fan_in)
    weight = jax.random.uniform(
        k_w, (in_channels, in_channels * 2), jnp.float32, -bound, bound
    )
    bias = jax.random.uniform(k_b, (in_channels,), jnp.float32, -bound, bound)
    return weight, bias


if __name__ == "__main__":
    key = jax.random.PRNGKey(0)
    in_channels = 8
    N, C, H = 2, 4, 16                     # x last dim must be in_channels * 2
    k_x, k_p = jax.random.split(key)

    x = jax.random.normal(k_x, (N, C, H, in_channels * 2), jnp.float32)
    weight, bias = init_params(k_p, in_channels)

    # tile_m=8 keeps the demo grid > 1 so the pipelined multi-tile path runs.
    out = conv_layer_forward(x, weight, bias, tile_m=8)
    out = jax.block_until_ready(out)

    # Pure-JAX reference check.
    ref = jnp.maximum(jnp.einsum("nchk,ok->ncho", x, weight) + bias, 0.0)
    ref = jnp.mean(ref, axis=(2, 3), keepdims=True)
    assert out.shape == (N, C, 1, 1)
    assert jnp.allclose(out, ref, atol=1e-4, rtol=1e-4), float(
        jnp.max(jnp.abs(out - ref))
    )

    print("KERNEL_OK")
</pallas_src>

<mosaic_0001>
module attributes {stable_mosaic.version = 11 : i64} {
  func.func @_convlayer_kernel(%arg0: i32, %arg1: memref<8x128xf32, #tpu.memory_space<vmem>>, %arg2: memref<128x64xf32, #tpu.memory_space<vmem>>, %arg3: memref<1x64xf32, #tpu.memory_space<vmem>>, %arg4: memref<64x8xf32, #tpu.memory_space<vmem>>, %arg5: memref<8x8xf32, #tpu.memory_space<vmem>>) attributes {dimension_semantics = [#tpu.dimension_semantics<parallel>], iteration_bounds = array<i64: 2>, scalar_prefetch = 0 : i64, scratch_operands = 0 : i64, tpu.core_type = #tpu.core_type<tc>, window_params = [{transform_indices = @transform_0, window_bounds = array<i64: 8, 128>}, {pipeline_mode = #tpu.pipeline_mode<synchronous>, transform_indices = @transform_1, window_bounds = array<i64: 128, 64>}, {pipeline_mode = #tpu.pipeline_mode<synchronous>, transform_indices = @transform_2, window_bounds = array<i64: 1, 64>}, {pipeline_mode = #tpu.pipeline_mode<synchronous>, transform_indices = @transform_3, window_bounds = array<i64: 64, 8>}, {transform_indices = @transform_4, window_bounds = array<i64: 8, 8>}]} {
    %c0 = arith.constant 0 : index
    %c0_0 = arith.constant 0 : index
    %0 = vector.load %arg1[%c0, %c0_0] : memref<8x128xf32, #tpu.memory_space<vmem>>, vector<8x128xf32>
    %c0_1 = arith.constant 0 : index
    %c0_2 = arith.constant 0 : index
    %1 = vector.load %arg2[%c0_1, %c0_2] : memref<128x64xf32, #tpu.memory_space<vmem>>, vector<128x64xf32>
    %cst = arith.constant dense<0.000000e+00> : vector<8x64xf32>
    %2 = tpu.matmul %0, %1, %cst {dimension_numbers = #tpu.dot_dimension_numbers<[1], [0], [0], [1], [0, 0, 1, 1], [], []>} : vector<8x128xf32>, vector<128x64xf32>, vector<8x64xf32> -> vector<8x64xf32>
    %c0_3 = arith.constant 0 : index
    %c0_4 = arith.constant 0 : index
    %3 = vector.load %arg3[%c0_3, %c0_4] : memref<1x64xf32, #tpu.memory_space<vmem>>, vector<1x64xf32>
    %4 = vector.broadcast %3 : vector<1x64xf32> to vector<8x64xf32>
    %5 = arith.addf %2, %4 : vector<8x64xf32>
    %cst_5 = arith.constant 0.000000e+00 : f32
    %6 = vector.broadcast %cst_5 : f32 to vector<8x64xf32>
    %7 = arith.maximumf %5, %6 : vector<8x64xf32>
    %c0_6 = arith.constant 0 : index
    %c0_7 = arith.constant 0 : index
    %8 = vector.load %arg4[%c0_6, %c0_7] : memref<64x8xf32, #tpu.memory_space<vmem>>, vector<64x8xf32>
    %cst_8 = arith.constant dense<0.000000e+00> : vector<8x8xf32>
    %9 = tpu.matmul %7, %8, %cst_8 {dimension_numbers = #tpu.dot_dimension_numbers<[1], [0], [0], [1], [0, 0, 1, 1], [], []>} : vector<8x64xf32>, vector<64x8xf32>, vector<8x8xf32> -> vector<8x8xf32>
    %c0_9 = arith.constant 0 : index
    %c0_10 = arith.constant 0 : index
    %10 = vector.load %arg5[%c0_9, %c0_10] : memref<8x8xf32, #tpu.memory_space<vmem>>, vector<8x8xf32>
    tpu.vector_store %arg5[%c0_9, %c0_10], %9 {strides = array<i32>} : memref<8x8xf32, #tpu.memory_space<vmem>>, vector<8x8xf32>,
    return
  }
  func.func @transform_0(%arg0: i32) -> (i32, i32) {
    %c0_i32 = arith.constant 0 : i32
    %c0_i32_0 = arith.constant 0 : i32
    return %arg0, %c0_i32 : i32, i32
  }
  func.func @transform_1(%arg0: i32) -> (i32, i32) {
    %c0_i32 = arith.constant 0 : i32
    %c0_i32_0 = arith.constant 0 : i32
    %c0_i32_1 = arith.constant 0 : i32
    return %c0_i32, %c0_i32_0 : i32, i32
  }
  func.func @transform_2(%arg0: i32) -> (i32, i32) {
    %c0_i32 = arith.constant 0 : i32
    %c0_i32_0 = arith.constant 0 : i32
    %c0_i32_1 = arith.constant 0 : i32
    return %c0_i32, %c0_i32_0 : i32, i32
  }
  func.func @transform_3(%arg0: i32) -> (i32, i32) {
    %c0_i32 = arith.constant 0 : i32
    %c0_i32_0 = arith.constant 0 : i32
    %c0_i32_1 = arith.constant 0 : i32
    return %c0_i32, %c0_i32_0 : i32, i32
  }
  func.func @transform_4(%arg0: i32) -> (i32, i32) {
    %c0_i32 = arith.constant 0 : i32
    %c0_i32_0 = arith.constant 0 : i32
    return %arg0, %c0_i32 : i32, i32
  }
}

</mosaic_0001>

<bundles_post_ra>
// kernel: tile.9
= control target key start
LH: loop header
LB: loop body
LE: loop exit
PB: predicated region body
PF: predicated region fallthrough
CT: control target
= control target key end

     0   :  { %s67_s10 = smov 56   ;;  %s68_s11 = smov 40   ;;  %vm3_vm0 = vcmask 64512   ;;  %vm9_vm1 = vcmask 523712   ;;  %vm15_vm2 = vcmask 458112   ;;  %vm21_vm3 = vcmask 392512   ;;  %s111_s0 = inlined_call_operand.vmem [shape: f32[8,8], index: 0, kind: input, shape index: {}]   ;;  %s112_s1 = inlined_call_operand.vmem [shape: f32[1,64], index: 1, kind: output, shape index: {}]  }
   0x1   :  { %v53_v0 = vld [vmem:[%s111_s0 + $0x7] sm:$0x1]   ;;  %v55_v1 = vld [vmem:[%s111_s0 + $0x5] sm:$0x1]   ;;  %v57_v2 = vld [vmem:[%s111_s0 + $0x3] sm:$0x1]  }
   0x2   :  { %7 = vrot.lane.b32.xlu0 %v53_v0, %s67_s10  ;;  %19 = vrot.lane.b32.xlu1 %v55_v1, %s68_s11  ;;  %s69_s14 = smov 24   ;;  %v54_v3 = vld [vmem:[%s111_s0 + $0x6] sm:$0x1]   ;;  %v56_v4 = vld [vmem:[%s111_s0 + $0x4] sm:$0x1]   ;;  %s70_s21 = smov 48  }
   0x3   :  { %31 = vrot.lane.b32.xlu2 %v57_v2, %s69_s14  ;;  %v58_v5 = vld [vmem:[%s111_s0 + $0x2] sm:$0x1]   ;;  %s71_s22 = smov 32   ;;  %s72_s23 = smov 16   ;;  %v59_v6 = vld [vmem:[%s111_s0 + $0x1] sm:$0x1]  }
   0x4   :  { %s73_s26 = smov 8   ;;  %v2_v7 = vld [vmem:[%s111_s0] sm:$0x1]   ;;  %vm27_vm4 = vcmask 326912   ;;  %vm33_vm5 = vcmask 261312   ;;  %vm39_vm6 = vcmask 195712  }
   0x5   :  { %4 = vst.msk [vmem:[#allocation0] sm:$0x1] %vm3_vm0, %v2_v7   ;;  %vm45_vm7 = vcmask 130112  }
   0xa   :  { %13 = vrot.lane.b32.xlu0 %v54_v3, %s70_s21  ;;  %25 = vrot.lane.b32.xlu1 %v56_v4, %s71_s22 }
   0xb   :  { %37 = vrot.lane.b32.xlu2 %v58_v5, %s72_s23 }
  0x12   :  { %43 = vrot.lane.b32.xlu0 %v59_v6, %s73_s26 }
  0x5d   :  { %v32_v8 = vpop.permute.xlu2 %31  }
  0x65   :  { %v38_v9 = vpop.permute.xlu2 %37  }
  0x74   :  { %v8_v10 = vpop.permute.xlu0 %7   ;;  %v20_v11 = vpop.permute.xlu1 %19  }
  0x75   :  { %10 = vst.msk [vmem:[#allocation0] sm:$0x1] %vm9_vm1, %v8_v10  }
  0x7c   :  { %v14_v12 = vpop.permute.xlu0 %13   ;;  %v26_v13 = vpop.permute.xlu1 %25  }
  0x7d   :  { %16 = vst.msk [vmem:[#allocation0] sm:$0x1] %vm15_vm2, %v14_v12  }
  0x7e   :  { %22 = vst.msk [vmem:[#allocation0] sm:$0x1] %vm21_vm3, %v20_v11  }
  0x7f   :  { %28 = vst.msk [vmem:[#allocation0] sm:$0x1] %vm27_vm4, %v26_v13  }
  0x80   :  { %34 = vst.msk [vmem:[#allocation0] sm:$0x1] %vm33_vm5, %v32_v8  }
  0x81   :  { %40 = vst.msk [vmem:[#allocation0] sm:$0x1] %vm39_vm6, %v38_v9  }
  0x84   :  { %v44_v14 = vpop.permute.xlu0 %43  }
  0x85   :  { %46 = vst.msk [vmem:[#allocation0] sm:$0x1] %vm45_vm7, %v44_v14  }
  0x8c   :  { %v49_v15 = vld [vmem:[#allocation0] sm:$0x1] }
  0x8d   :  { %52 = vst [vmem:[%s112_s1] sm:$0x1] %v49_v15 }

// kernel: tile.8
= control target key start
LH: loop header
LB: loop body
LE: loop exit
PB: predicated region body
PF: predicated region fallthrough
CT: control target
= control target key end

     0   :  { %s22_s0 = inlined_call_operand.vmem [shape: f32[8], index: 0, kind: input, shape index: {}]   ;;  %s23_s1 = inlined_call_operand.vmem [shape: f32[8,8], index: 1, kind: output, shape index: {}]  }
   0x1   :  { %v4_v0 = vld [vmem:[%s22_s0] ss:$0 sm:$0xff] }
   0x2   :  { %5 = vst [vmem:[%s23_s1] sm:$0xff] %v4_v0 }

// kernel: conv_layer_forward.1
= control target key start
LH: loop header
LB: loop body
LE: loop exit
PB: predicated region body
PF: predicated region fallthrough
CT: control target
= control target key end

     0   :  { %s374_s15 = smov 0   ;;  %s473_s0 = inlined_call_operand.vmem [shape: f32[16,128], index: 0, kind: input, shape index: {}]   ;;  %s474_s1 = inlined_call_operand.vmem [shape: f32[128,64], index: 1, kind: input, shape index: {}]   ;;  %s475_s2 = inlined_call_operand.vmem [shape: f32[1,64], index: 2, kind: input, shape index: {}]   ;;  %s476_s3 = inlined_call_operand.vmem [shape: f32[64,8], index: 3, kind: input, shape index: {}]   ;;  %s477_s4 = inlined_call_operand.vmem [shape: f32[16,8], index: 4, kind: output, shape index: {}]  }
   0x1 LB: > { %s322_s16 = sadd.s32 4294967295, %s347_s15   ;;  %p326_p0 = scmp.ge.s32.totalorder %s347_s15, 1  ;;  %s347_s15 = sphi %s374_s15, %s14_s15  }
   0x2   : > { %p161_p1 = scmp.lt.s32.totalorder %s347_s15, 3 }
   0x4   : > { %p162_p2 = pnand %p326_p0, %p161_p1 }
   0x5   : > { %p185_p3 = scmp.lt.s32.totalorder (!%p162_p2), %s322_s16, 1 }
   0x6   : > { %165 = sbr.rel (%p162_p2) target bundleno = 300 (0x12c), region = 36 }
   0xb   : > { %v209_v0 = vld [vmem:[%s474_s1 + $0x78] sm:$0xff]  ;;  %v208_v1 = vld [vmem:[%s474_s1 + $0x70] sm:$0xff]  ;;  %v207_v2 = vld [vmem:[%s474_s1 + $0x68] sm:$0xff]  ;;  %s479_s16 = smov (!%p185_p3, %s322_s16), 1  ;;  %vm243_vm0 = vcmask 523264   ;;  %vm267_vm1 = vcmask 64512  }
   0xc   : > { %214 = vmatpush.msra.mxu0 %v209_v0  ;;  %v206_v3 = vld [vmem:[%s474_s1 + $0x60] sm:$0xff]  ;;  %v242_v4 = vld [vmem:[%s476_s3 + $0x38] sm:$0xff]  ;;  %v241_v5 = vld [vmem:[%s476_s3 + $0x30] sm:$0xff]  ;;  %s327_s29 = sshll.u32 %s479_s16, 3 }
   0xd   : > { %v205_v6 = vld [vmem:[%s474_s1 + $0x58] sm:$0xff]  ;;  %255 = vmatpush.msra.mxu1 %v242_v4  ;;  %v240_v7 = vld [vmem:[%s476_s3 + $0x28] sm:$0xff]  ;;  %v204_v8 = vld [vmem:[%s474_s1 + $0x50] sm:$0xff]  ;;  %s188_s10 = scalar_lea.vmem %s473_s0, %s327_s29  ;;  %s192_s24 = scalar_lea.vmem %s477_s4, %s327_s29 }
   0xe   : > { %215 = vmatpush.msra.mxu0 %v208_v1  ;;  %v239_v9 = vld [vmem:[%s476_s3 + $0x20] sm:$0xff]  ;;  %v203_v10 = vld [vmem:[%s474_s1 + $0x48] sm:$0xff]  ;;  %v238_v11 = vld [vmem:[%s476_s3 + $0x18] sm:$0xff] }
   0xf   : > { %256 = vmatpush.msra.mxu1 %v241_v5  ;;  %v202_v12 = vld [vmem:[%s474_s1 + $0x40] sm:$0xff]  ;;  %v201_v13 = vld [vmem:[%s474_s1 + $0x38] sm:$0xff]  ;;  %v200_v14 = vld [vmem:[%s474_s1 + $0x30] sm:$0xff] }
  0x10   : > { %216 = vmatpush.msra.mxu0 %v207_v2  ;;  %v199_v15 = vld [vmem:[%s474_s1 + $0x28] sm:$0xff]  ;;  %v198_v16 = vld [vmem:[%s474_s1 + $0x20] sm:$0xff]  ;;  %v197_v17 = vld [vmem:[%s474_s1 + $0x18] sm:$0xff] }
  0x11   : > { %257 = vmatpush.msra.mxu1 %v240_v7  ;;  %v196_v18 = vld [vmem:[%s474_s1 + $0x10] sm:$0xff]  ;;  %v195_v19 = vld [vmem:[%s474_s1 + $0x8] sm:$0xff]  ;;  %v194_v20 = vld [vmem:[%s474_s1] sm:$0xff] }
  0x12   : > { %217 = vmatpush.msra.mxu0 %v206_v3  ;;  %v193_v21 = vld [vmem:[%s188_s10] sm:$0xff]  ;;  %v237_v22 = vld [vmem:[%s476_s3 + $0x10] sm:$0xff]  ;;  %v236_v23 = vld [vmem:[%s476_s3 + $0x8] sm:$0xff] }
  0x13   : > { %258 = vmatpush.msra.mxu1 %v239_v9  ;;  %v235_v24 = vld [vmem:[%s476_s3] sm:$0xff] }
  0x14   : > { %218 = vmatpush.msra.mxu0 %v205_v6  ;;  %v340_v25 = vld [vmem:[%s475_s2] ss:$0 sm:$0xff] }
  0x15   : > { %259 = vmatpush.msra.mxu1 %v238_v11 }
  0x16   : > { %219 = vmatpush.msra.mxu0 %v204_v8 }
  0x17   : > { %260 = vmatpush.msra.mxu1 %v237_v22 }
  0x18   : > { %220 = vmatpush.msra.mxu0 %v203_v10 }
  0x19   : > { %261 = vmatpush.msra.mxu1 %v236_v23 }
  0x1a   : > { %221 = vmatpush.msra.mxu0 %v202_v12 }
  0x1b   : > { %262 = vmatpush.msra.mxu1 %v235_v24 }
  0x1c   : > { %222 = vmatpush.msra.mxu0 %v201_v13 }
  0x1e   : > { %223 = vmatpush.msra.mxu0 %v200_v14 }
  0x20   : > { %224 = vmatpush.msra.mxu0 %v199_v15 }
  0x22   : > { %225 = vmatpush.msra.mxu0 %v198_v16 }
  0x24   : > { %226 = vmatpush.msra.mxu0 %v197_v17 }
  0x26   : > { %227 = vmatpush.msra.mxu0 %v196_v18 }
  0x28   : > { %228 = vmatpush.msra.mxu0 %v195_v19 }
  0x2a   : > { %229 = vmatpush.msra.mxu0 %v194_v20 }
  0x2b   : > { %230 = vmatmul.f32.vlgmr.msra.gmra.mxu0 %v193_v21 }
  0xa8   : > { %v231_v26 = vpop.f32.mrf.mxu0 }
  0xa9   : > { %v232_v27 = vadd.f32 %v340_v25, %v231_v26 }
  0xab   : > { %v234_v28 = vmax.f32 %v232_v27, 0.0 }
  0xad   : > { %329 = vmatmul.msk.f32.vlgmr.msra.gmra.mxu1 %vm243_vm0, %v234_v28 }
 0x12a   : > { %v264_v29 = vpop.f32.mrf.mxu1 }
 0x12b   : > { %268 = vst.msk [vmem:[%s192_s24] sm:$0xff] %vm267_vm1, %v264_v29 }
 0x12c PF: > { %s14_s15 = sadd.s32 1, %s347_s15  }
 0x12d   : > { %p11_p4 = scmp.ge.s32.totalorder %s14_s15, 4  }
 0x12f   :  { %13 = sbr.rel (!%p11_p4) target bundleno = 1 (0x1), region = 66 }

</bundles_post_ra>
